<compile_context>
chip_gen: v7x
topology: tpu7x:2x2x1
jax: 0.10.0
libtpu: 0.0.40
codegen_flags: <defaults>
</compile_context>

<pallas_src>
import jax
import jax.numpy as jnp
from jax.experimental import pallas as pl
from jax.experimental.pallas import tpu as pltpu

LANE = 128
SUBLANE = 8


def _round_up(x, m):
    return (x + m - 1) // m * m


def mlp_classifier_kernel(x_ref, w1_ref, b1_ref, w2_ref, b2_ref, wl_ref, out_ref):
    # fc1: MXU matmul (bf16 inputs, f32 accumulation); bias + ReLU in f32 (VPU).
    h1 = jnp.dot(x_ref[...], w1_ref[...], preferred_element_type=jnp.float32)
    h1 = jnp.maximum(h1 + b1_ref[...], 0.0)

    # fc2: cast activations to the MXU dtype only at the dot input; accumulation
    # and all elementwise math stay f32.
    h2 = jnp.dot(h1.astype(w2_ref.dtype), w2_ref[...],
                 preferred_element_type=jnp.float32)
    h2 = jnp.maximum(h2 + b2_ref[...], 0.0)

    # last_fc (out_features=1, no bias): contract H against an [8, H] replicated
    # Wl with an rhs-transposed dot, producing logits already lane-dense as
    # [8, tile_n] (all 8 rows identical; 8 sublanes is MXU granularity anyway).
    logit = jax.lax.dot_general(
        wl_ref[...], h2,
        dimension_numbers=(((1,), (1,)), ((), ())),
        preferred_element_type=jnp.float32)            # [8, tile_n]

    # Lane-dense [1, tile_n] store: unmasked full-width vst.
    out_ref[...] = jax.nn.sigmoid(logit[0:1, :]).astype(out_ref.dtype)


def mlp_classifier_forward(x, W1, b1, W2, b2, Wl, *, tile_n=512, use_bf16=True):
    """MLPClassifier.forward in one Pallas TPU kernel.

    Args use PyTorch nn.Linear layouts:
      x : [N, D_in]
      W1: [H, D_in], b1: [H]     layer[0] Linear + ReLU
      W2: [H, H],    b2: [H]     layer[2] Linear + ReLU
      Wl: [1, H]                 last_fc (no bias)
    Returns sigmoid probabilities shaped like torch's .squeeze():
      [N] for N > 1, scalar for N == 1.
    """
    N, d_in = x.shape
    hid = W1.shape[0]
    emb = W2.shape[0]

    # --- Zero-pad feature dims to full 128-lane vregs / dense MXU columns.
    # Zero padding keeps the math exact: padded input features are 0, padded
    # hidden units get 0 weight + 0 bias (ReLU(0)=0) and 0 last_fc weight. ---
    d_in_p = _round_up(d_in, LANE)
    hid_p = _round_up(hid, LANE)
    emb_p = _round_up(emb, LANE)

    mxu_dtype = jnp.bfloat16 if use_bf16 else x.dtype
    itemsize = jnp.dtype(mxu_dtype).itemsize

    # Weights -> [in, out] so the kernel does plain x @ W; bf16 for the MXU.
    w1_k = jnp.zeros((d_in_p, hid_p), mxu_dtype).at[:d_in, :hid].set(
        W1.T.astype(mxu_dtype))
    w2_k = jnp.zeros((hid_p, emb_p), mxu_dtype).at[:hid, :emb].set(
        W2.T.astype(mxu_dtype))
    b1_row = jnp.zeros((1, hid_p), jnp.float32).at[:, :hid].set(
        b1.reshape(1, hid).astype(jnp.float32))
    b2_row = jnp.zeros((1, emb_p), jnp.float32).at[:, :emb].set(
        b2.reshape(1, emb).astype(jnp.float32))
    wl_rows = jnp.zeros((SUBLANE, emb_p), jnp.float32).at[:, :emb].set(
        jnp.broadcast_to(Wl.reshape(1, emb).astype(jnp.float32), (SUBLANE, emb)))

    # --- Batch tiling: tile_n a multiple of 128 (bf16 packing, MXU M dim, and
    # the lane-dense [1, tile_n] output); capped so >= 2 grid points exist when
    # N is large enough (otherwise v7x's second TensorCore idles). ---
    tile_n = max(LANE, min(tile_n, _round_up(pl.cdiv(N, 2), LANE)))
    n_pad = _round_up(N, tile_n)
    num_tiles = n_pad // tile_n

    x_k = jnp.zeros((n_pad, d_in_p), mxu_dtype).at[:N, :d_in].set(
        x.astype(mxu_dtype))

    # --- Explicit scoped-VMEM budget (default is 16 MiB on v5e / 32 MiB on
    # v6e+, which would gate tile_n, not physical VMEM). Capped at 48 MiB to
    # stay under v7x's 64 MiB physical with headroom. ---
    weight_bytes = (d_in_p * hid_p + hid_p * emb_p) * itemsize
    small_bytes = (hid_p + emb_p + SUBLANE * emb_p) * 4
    stream_bytes = 2 * tile_n * d_in_p * itemsize + 2 * tile_n * 4  # x tile + out row (dbl-buf)
    interm_bytes = 2 * tile_n * max(hid_p, emb_p) * 4               # h1/h2 f32
    vmem_need = 2 * weight_bytes + small_bytes + stream_bytes + interm_bytes
    vmem_limit = int(min(max(2 * vmem_need, 32 * 1024 * 1024), 48 * 1024 * 1024))

    cost = pl.CostEstimate(
        flops=2 * n_pad * (d_in_p * hid_p + hid_p * emb_p + emb_p),
        transcendentals=2 * n_pad,  # sigmoid ~= exp + reciprocal per row
        bytes_accessed=(n_pad * d_in_p * itemsize + weight_bytes
                        + small_bytes + n_pad * 4),
    )

    def build(single_buffer_weights):
        if single_buffer_weights:
            # Constant-index blocks are DMA'd once; no need to double-buffer them.
            resident = lambda shape: pl.BlockSpec(
                shape, lambda i: (0, 0), pipeline_mode=pl.Buffered(1))
        else:
            resident = lambda shape: pl.BlockSpec(shape, lambda i: (0, 0))
        return pl.pallas_call(
            mlp_classifier_kernel,
            out_shape=jax.ShapeDtypeStruct((1, n_pad), jnp.float32),
            grid=(num_tiles,),
            in_specs=[
                pl.BlockSpec((tile_n, d_in_p), lambda i: (i, 0)),  # x: streamed per tile
                resident((d_in_p, hid_p)),                         # W1^T (VMEM resident)
                resident((1, hid_p)),                              # b1
                resident((hid_p, emb_p)),                          # W2^T
                resident((1, emb_p)),                              # b2
                resident((SUBLANE, emb_p)),                        # last_fc rows
            ],
            out_specs=pl.BlockSpec((1, tile_n), lambda i: (0, i)),  # lane-dense row
            compiler_params=pltpu.CompilerParams(
                dimension_semantics=("parallel",),
                vmem_limit_bytes=vmem_limit,
            ),
            cost_estimate=cost,
        )

    args = (x_k, w1_k, b1_row, w2_k, b2_row, wl_rows)
    try:
        out_row = jax.block_until_ready(build(True)(*args))
    except Exception:
        # pipeline_mode=pl.Buffered(1) not supported by this jax/libtpu combo:
        # fall back to default double-buffered resident weights.
        out_row = build(False)(*args)

    probs = out_row[0, :N]
    # Match torch's .squeeze(): a single-row batch collapses to a 0-d result.
    return probs if N != 1 else probs[0]


def reference_forward_f32(x, W1, b1, W2, b2, Wl):
    h1 = jnp.maximum(x @ W1.T + b1, 0.0)
    h2 = jnp.maximum(h1 @ W2.T + b2, 0.0)
    return jax.nn.sigmoid(h2 @ Wl.T)[:, 0]


if __name__ == "__main__":
    # Small deterministic shapes consistent with MLPClassifier(input_dim=32, factor=1):
    # batch N=16, D_in=32, hidden=emb=32, one sigmoid output per row.
    N, D_IN, FACTOR = 16, 32, 1
    HID = D_IN // FACTOR

    key = jax.random.PRNGKey(0)
    k_x, k_w1, k_b1, k_w2, k_b2, k_wl = jax.random.split(key, 6)

    x = jax.random.normal(k_x, (N, D_IN), dtype=jnp.float32)
    # PyTorch nn.Linear weight layout is [out, in].
    W1 = jax.random.normal(k_w1, (HID, D_IN), dtype=jnp.float32) * 0.1
    b1 = jax.random.normal(k_b1, (HID,), dtype=jnp.float32) * 0.1
    W2 = jax.random.normal(k_w2, (HID, HID), dtype=jnp.float32) * 0.1
    b2 = jax.random.normal(k_b2, (HID,), dtype=jnp.float32) * 0.1
    Wl = jax.random.normal(k_wl, (1, HID), dtype=jnp.float32) * 0.1

    out = mlp_classifier_forward(x, W1, b1, W2, b2, Wl)
    out = jax.block_until_ready(out)

    ref = reference_forward_f32(x, W1, b1, W2, b2, Wl)
    assert out.shape == (N,), f"bad output shape {out.shape}"
    max_err = jnp.max(jnp.abs(out - ref))
    # bf16 MXU inputs with f32 accumulation: sigmoid outputs agree to ~1e-3.
    assert jnp.allclose(out, ref, rtol=1e-2, atol=1e-2), \
        f"Pallas output mismatch vs reference (max err {max_err})"

    print("KERNEL_OK")
</pallas_src>

<mosaic_0001>
module attributes {stable_mosaic.version = 11 : i64} {
  func.func @mlp_classifier_kernel(%arg0: i32, %arg1: memref<128x128xbf16, #tpu.memory_space<vmem>>, %arg2: memref<128x128xbf16, #tpu.memory_space<vmem>>, %arg3: memref<1x128xf32, #tpu.memory_space<vmem>>, %arg4: memref<128x128xbf16, #tpu.memory_space<vmem>>, %arg5: memref<1x128xf32, #tpu.memory_space<vmem>>, %arg6: memref<8x128xf32, #tpu.memory_space<vmem>>, %arg7: memref<1x128xf32, #tpu.memory_space<vmem>>) attributes {dimension_semantics = [#tpu.dimension_semantics<parallel>], iteration_bounds = array<i64: 1>, scalar_prefetch = 0 : i64, scratch_operands = 0 : i64, tpu.core_type = #tpu.core_type<tc>, window_params = [{transform_indices = @transform_0, window_bounds = array<i64: 128, 128>}, {pipeline_mode = #tpu.pipeline_mode<synchronous>, transform_indices = @transform_1, window_bounds = array<i64: 128, 128>}, {pipeline_mode = #tpu.pipeline_mode<synchronous>, transform_indices = @transform_2, window_bounds = array<i64: 1, 128>}, {pipeline_mode = #tpu.pipeline_mode<synchronous>, transform_indices = @transform_3, window_bounds = array<i64: 128, 128>}, {pipeline_mode = #tpu.pipeline_mode<synchronous>, transform_indices = @transform_4, window_bounds = array<i64: 1, 128>}, {pipeline_mode = #tpu.pipeline_mode<synchronous>, transform_indices = @transform_5, window_bounds = array<i64: 8, 128>}, {transform_indices = @transform_6, window_bounds = array<i64: 1, 128>}]} {
    %c0 = arith.constant 0 : index
    %c0_0 = arith.constant 0 : index
    %0 = vector.load %arg1[%c0, %c0_0] : memref<128x128xbf16, #tpu.memory_space<vmem>>, vector<128x128xbf16>
    %c0_1 = arith.constant 0 : index
    %c0_2 = arith.constant 0 : index
    %1 = vector.load %arg2[%c0_1, %c0_2] : memref<128x128xbf16, #tpu.memory_space<vmem>>, vector<128x128xbf16>
    %cst = arith.constant dense<0.000000e+00> : vector<128x128xf32>
    %2 = tpu.matmul %0, %1, %cst {dimension_numbers = #tpu.dot_dimension_numbers<[1], [0], [0], [1], [0, 0, 1, 1], [], []>} : vector<128x128xbf16>, vector<128x128xbf16>, vector<128x128xf32> -> vector<128x128xf32>
    %c0_3 = arith.constant 0 : index
    %c0_4 = arith.constant 0 : index
    %3 = vector.load %arg3[%c0_3, %c0_4] : memref<1x128xf32, #tpu.memory_space<vmem>>, vector<1x128xf32>
    %4 = vector.broadcast %3 : vector<1x128xf32> to vector<128x128xf32>
    %5 = arith.addf %2, %4 : vector<128x128xf32>
    %cst_5 = arith.constant 0.000000e+00 : f32
    %6 = vector.broadcast %cst_5 : f32 to vector<128x128xf32>
    %7 = arith.maximumf %5, %6 : vector<128x128xf32>
    %8 = arith.truncf %7 : vector<128x128xf32> to vector<128x128xbf16>
    %c0_6 = arith.constant 0 : index
    %c0_7 = arith.constant 0 : index
    %9 = vector.load %arg4[%c0_6, %c0_7] : memref<128x128xbf16, #tpu.memory_space<vmem>>, vector<128x128xbf16>
    %cst_8 = arith.constant dense<0.000000e+00> : vector<128x128xf32>
    %10 = tpu.matmul %8, %9, %cst_8 {dimension_numbers = #tpu.dot_dimension_numbers<[1], [0], [0], [1], [0, 0, 1, 1], [], []>} : vector<128x128xbf16>, vector<128x128xbf16>, vector<128x128xf32> -> vector<128x128xf32>
    %c0_9 = arith.constant 0 : index
    %c0_10 = arith.constant 0 : index
    %11 = vector.load %arg5[%c0_9, %c0_10] : memref<1x128xf32, #tpu.memory_space<vmem>>, vector<1x128xf32>
    %12 = vector.broadcast %11 : vector<1x128xf32> to vector<128x128xf32>
    %13 = arith.addf %10, %12 : vector<128x128xf32>
    %cst_11 = arith.constant 0.000000e+00 : f32
    %14 = vector.broadcast %cst_11 : f32 to vector<128x128xf32>
    %15 = arith.maximumf %13, %14 : vector<128x128xf32>
    %c0_12 = arith.constant 0 : index
    %c0_13 = arith.constant 0 : index
    %16 = vector.load %arg6[%c0_12, %c0_13] : memref<8x128xf32, #tpu.memory_space<vmem>>, vector<8x128xf32>
    %cst_14 = arith.constant dense<0.000000e+00> : vector<8x128xf32>
    %17 = tpu.matmul %16, %15, %cst_14 {dimension_numbers = #tpu.dot_dimension_numbers<[1], [1], [0], [0], [0, 0, 1, 0], [], []>} : vector<8x128xf32>, vector<128x128xf32>, vector<8x128xf32> -> vector<8x128xf32>
    %18 = vector.extract_strided_slice %17 {offsets = [0, 0], sizes = [1, 128], strides = [1, 1]} : vector<8x128xf32> to vector<1x128xf32>
    %19 = arith.negf %18 : vector<1x128xf32>
    %20 = math.exp %19 : vector<1x128xf32>
    %cst_15 = arith.constant 1.000000e+00 : f32
    %21 = vector.broadcast %cst_15 : f32 to vector<1x128xf32>
    %22 = arith.addf %21, %20 : vector<1x128xf32>
    %23 = arith.divf %21, %22 : vector<1x128xf32>
    %c0_16 = arith.constant 0 : index
    %c0_17 = arith.constant 0 : index
    %24 = vector.load %arg7[%c0_16, %c0_17] : memref<1x128xf32, #tpu.memory_space<vmem>>, vector<1x128xf32>
    tpu.vector_store %arg7[%c0_16, %c0_17], %23 {strides = array<i32>} : memref<1x128xf32, #tpu.memory_space<vmem>>, vector<1x128xf32>,
    return
  }
  func.func @transform_0(%arg0: i32) -> (i32, i32) {
    %c0_i32 = arith.constant 0 : i32
    %c0_i32_0 = arith.constant 0 : i32
    return %arg0, %c0_i32 : i32, i32
  }
  func.func @transform_1(%arg0: i32) -> (i32, i32) {
    %c0_i32 = arith.constant 0 : i32
    %c0_i32_0 = arith.constant 0 : i32
    %c0_i32_1 = arith.constant 0 : i32
    return %c0_i32, %c0_i32_0 : i32, i32
  }
  func.func @transform_2(%arg0: i32) -> (i32, i32) {
    %c0_i32 = arith.constant 0 : i32
    %c0_i32_0 = arith.constant 0 : i32
    %c0_i32_1 = arith.constant 0 : i32
    return %c0_i32, %c0_i32_0 : i32, i32
  }
  func.func @transform_3(%arg0: i32) -> (i32, i32) {
    %c0_i32 = arith.constant 0 : i32
    %c0_i32_0 = arith.constant 0 : i32
    %c0_i32_1 = arith.constant 0 : i32
    return %c0_i32, %c0_i32_0 : i32, i32
  }
  func.func @transform_4(%arg0: i32) -> (i32, i32) {
    %c0_i32 = arith.constant 0 : i32
    %c0_i32_0 = arith.constant 0 : i32
    %c0_i32_1 = arith.constant 0 : i32
    return %c0_i32, %c0_i32_0 : i32, i32
  }
  func.func @transform_5(%arg0: i32) -> (i32, i32) {
    %c0_i32 = arith.constant 0 : i32
    %c0_i32_0 = arith.constant 0 : i32
    %c0_i32_1 = arith.constant 0 : i32
    return %c0_i32, %c0_i32_0 : i32, i32
  }
  func.func @transform_6(%arg0: i32) -> (i32, i32) {
    %c0_i32 = arith.constant 0 : i32
    %c0_i32_0 = arith.constant 0 : i32
    return %c0_i32, %arg0 : i32, i32
  }
}

module attributes {stable_mosaic.version = 11 : i64} {
  func.func @mlp_classifier_kernel(%arg0: i32, %arg1: memref<128x128xbf16, #tpu.memory_space<vmem>>, %arg2: memref<128x128xbf16, #tpu.memory_space<vmem>>, %arg3: memref<1x128xf32, #tpu.memory_space<vmem>>, %arg4: memref<128x128xbf16, #tpu.memory_space<vmem>>, %arg5: memref<1x128xf32, #tpu.memory_space<vmem>>, %arg6: memref<8x128xf32, #tpu.memory_space<vmem>>, %arg7: memref<1x128xf32, #tpu.memory_space<vmem>>) attributes {dimension_semantics = [#tpu.dimension_semantics<parallel>], iteration_bounds = array<i64: 1>, scalar_prefetch = 0 : i64, scratch_operands = 0 : i64, tpu.core_type = #tpu.core_type<tc>, window_params = [{transform_indices = @transform_0, window_bounds = array<i64: 128, 128>}, {pipeline_mode = #tpu.pipeline_mode<synchronous>, transform_indices = @transform_1, window_bounds = array<i64: 128, 128>}, {pipeline_mode = #tpu.pipeline_mode<synchronous>, transform_indices = @transform_2, window_bounds = array<i64: 1, 128>}, {pipeline_mode = #tpu.pipeline_mode<synchronous>, transform_indices = @transform_3, window_bounds = array<i64: 128, 128>}, {pipeline_mode = #tpu.pipeline_mode<synchronous>, transform_indices = @transform_4, window_bounds = array<i64: 1, 128>}, {pipeline_mode = #tpu.pipeline_mode<synchronous>, transform_indices = @transform_5, window_bounds = array<i64: 8, 128>}, {transform_indices = @transform_6, window_bounds = array<i64: 1, 128>}]} {
    %c0 = arith.constant 0 : index
    %c0_0 = arith.constant 0 : index
    %0 = vector.load %arg1[%c0, %c0_0] : memref<128x128xbf16, #tpu.memory_space<vmem>>, vector<128x128xbf16>
    %c0_1 = arith.constant 0 : index
    %c0_2 = arith.constant 0 : index
    %1 = vector.load %arg2[%c0_1, %c0_2] : memref<128x128xbf16, #tpu.memory_space<vmem>>, vector<128x128xbf16>
    %cst = arith.constant dense<0.000000e+00> : vector<128x128xf32>
    %2 = tpu.matmul %0, %1, %cst {dimension_numbers = #tpu.dot_dimension_numbers<[1], [0], [0], [1], [0, 0, 1, 1], [], []>} : vector<128x128xbf16>, vector<128x128xbf16>, vector<128x128xf32> -> vector<128x128xf32>
    %c0_3 = arith.constant 0 : index
    %c0_4 = arith.constant 0 : index
    %3 = vector.load %arg3[%c0_3, %c0_4] : memref<1x128xf32, #tpu.memory_space<vmem>>, vector<1x128xf32>
    %4 = vector.broadcast %3 : vector<1x128xf32> to vector<128x128xf32>
    %5 = arith.addf %2, %4 : vector<128x128xf32>
    %cst_5 = arith.constant 0.000000e+00 : f32
    %6 = vector.broadcast %cst_5 : f32 to vector<128x128xf32>
    %7 = arith.maximumf %5, %6 : vector<128x128xf32>
    %8 = arith.truncf %7 : vector<128x128xf32> to vector<128x128xbf16>
    %c0_6 = arith.constant 0 : index
    %c0_7 = arith.constant 0 : index
    %9 = vector.load %arg4[%c0_6, %c0_7] : memref<128x128xbf16, #tpu.memory_space<vmem>>, vector<128x128xbf16>
    %cst_8 = arith.constant dense<0.000000e+00> : vector<128x128xf32>
    %10 = tpu.matmul %8, %9, %cst_8 {dimension_numbers = #tpu.dot_dimension_numbers<[1], [0], [0], [1], [0, 0, 1, 1], [], []>} : vector<128x128xbf16>, vector<128x128xbf16>, vector<128x128xf32> -> vector<128x128xf32>
    %c0_9 = arith.constant 0 : index
    %c0_10 = arith.constant 0 : index
    %11 = vector.load %arg5[%c0_9, %c0_10] : memref<1x128xf32, #tpu.memory_space<vmem>>, vector<1x128xf32>
    %12 = vector.broadcast %11 : vector<1x128xf32> to vector<128x128xf32>
    %13 = arith.addf %10, %12 : vector<128x128xf32>
    %cst_11 = arith.constant 0.000000e+00 : f32
    %14 = vector.broadcast %cst_11 : f32 to vector<128x128xf32>
    %15 = arith.maximumf %13, %14 : vector<128x128xf32>
    %c0_12 = arith.constant 0 : index
    %c0_13 = arith.constant 0 : index
    %16 = vector.load %arg6[%c0_12, %c0_13] : memref<8x128xf32, #tpu.memory_space<vmem>>, vector<8x128xf32>
    %cst_14 = arith.constant dense<0.000000e+00> : vector<8x128xf32>
    %17 = tpu.matmul %16, %15, %cst_14 {dimension_numbers = #tpu.dot_dimension_numbers<[1], [1], [0], [0], [0, 0, 1, 0], [], []>} : vector<8x128xf32>, vector<128x128xf32>, vector<8x128xf32> -> vector<8x128xf32>
    %18 = vector.extract_strided_slice %17 {offsets = [0, 0], sizes = [1, 128], strides = [1, 1]} : vector<8x128xf32> to vector<1x128xf32>
    %19 = arith.negf %18 : vector<1x128xf32>
    %20 = math.exp %19 : vector<1x128xf32>
    %cst_15 = arith.constant 1.000000e+00 : f32
    %21 = vector.broadcast %cst_15 : f32 to vector<1x128xf32>
    %22 = arith.addf %21, %20 : vector<1x128xf32>
    %23 = arith.divf %21, %22 : vector<1x128xf32>
    %c0_16 = arith.constant 0 : index
    %c0_17 = arith.constant 0 : index
    %24 = vector.load %arg7[%c0_16, %c0_17] : memref<1x128xf32, #tpu.memory_space<vmem>>, vector<1x128xf32>
    tpu.vector_store %arg7[%c0_16, %c0_17], %23 {strides = array<i32>} : memref<1x128xf32, #tpu.memory_space<vmem>>, vector<1x128xf32>,
    return
  }
  func.func @transform_0(%arg0: i32) -> (i32, i32) {
    %c0_i32 = arith.constant 0 : i32
    %c0_i32_0 = arith.constant 0 : i32
    return %arg0, %c0_i32 : i32, i32
  }
  func.func @transform_1(%arg0: i32) -> (i32, i32) {
    %c0_i32 = arith.constant 0 : i32
    %c0_i32_0 = arith.constant 0 : i32
    %c0_i32_1 = arith.constant 0 : i32
    return %c0_i32, %c0_i32_0 : i32, i32
  }
  func.func @transform_2(%arg0: i32) -> (i32, i32) {
    %c0_i32 = arith.constant 0 : i32
    %c0_i32_0 = arith.constant 0 : i32
    %c0_i32_1 = arith.constant 0 : i32
    return %c0_i32, %c0_i32_0 : i32, i32
  }
  func.func @transform_3(%arg0: i32) -> (i32, i32) {
    %c0_i32 = arith.constant 0 : i32
    %c0_i32_0 = arith.constant 0 : i32
    %c0_i32_1 = arith.constant 0 : i32
    return %c0_i32, %c0_i32_0 : i32, i32
  }
  func.func @transform_4(%arg0: i32) -> (i32, i32) {
    %c0_i32 = arith.constant 0 : i32
    %c0_i32_0 = arith.constant 0 : i32
    %c0_i32_1 = arith.constant 0 : i32
    return %c0_i32, %c0_i32_0 : i32, i32
  }
  func.func @transform_5(%arg0: i32) -> (i32, i32) {
    %c0_i32 = arith.constant 0 : i32
    %c0_i32_0 = arith.constant 0 : i32
    %c0_i32_1 = arith.constant 0 : i32
    return %c0_i32, %c0_i32_0 : i32, i32
  }
  func.func @transform_6(%arg0: i32) -> (i32, i32) {
    %c0_i32 = arith.constant 0 : i32
    %c0_i32_0 = arith.constant 0 : i32
    return %c0_i32, %arg0 : i32, i32
  }
}

</mosaic_0001>

<bundles_post_ra>
// kernel: tpu_custom_call.1
= control target key start
LH: loop header
LB: loop body
LE: loop exit
PB: predicated region body
PF: predicated region fallthrough
CT: control target
= control target key end

     0   :  { %11 = vsyncpa [#allocation3], 0  ;;  %s1055_s0 = inlined_call_operand.hbm [shape: bf16[128,128], index: 0, kind: input, shape index: {}]   ;;  %s1056_s1 = inlined_call_operand.hbm [shape: bf16[128,128], index: 1, kind: input, shape index: {}]   ;;  %s1057_s2 = inlined_call_operand.vmem [shape: f32[1,128], index: 2, kind: input, shape index: {}]   ;;  %s1058_s3 = inlined_call_operand.hbm [shape: bf16[128,128], index: 3, kind: input, shape index: {}]   ;;  %s1059_s4 = inlined_call_operand.vmem [shape: f32[1,128], index: 4, kind: input, shape index: {}]   ;;  %s1060_s5 = inlined_call_operand.vmem [shape: f32[8,128], index: 5, kind: input, shape index: {}]   ;;  %s1061_s6 = inlined_call_operand.hbm [shape: f32[1,128], index: 6, kind: output, shape index: {}]  }
   0x1   :  { %12 = vsyncpa [#allocation6], 0 }
   0x2   :  { %13 = vsyncpa [#allocation4], 0  ;;  %s930_s21 = smov [#allocation5]   ;;  %s931_s23 = smov [#allocation2]  }
   0x3   :  { %s31_s22 = sshll.u32 %s930_s21, 4  ;;  %s19_s24 = sshll.u32 %s931_s23, 4  ;;  %s32_s22 = int_to_ptr.vmem [resolvable:$true] %s31_s22  ;;  %s974_s24 = int_to_ptr.vmem [resolvable:$true] %s19_s24 }
   0x4   :  { %s836_s27 = scalar_lea.hbm %s1056_s1, 1024 }
   0x5   :  { %p837_p0 = scmp.ne.s32.totalorder %s1056_s1, %s836_s27  ;;  %p840_p1 = scmp.lt.u32.totalorder %s836_s27, %s1056_s1 }
   0x7   :  { %p842_p2 = pnand %p840_p1, %p837_p0 }
   0x9   :  { %845 = shalt.err (!%p842_p2)
}
   0xa   :  { %s846_s8 = scalar_lea.vmem %s32_s22, 1024  ;;  %p851_p4 = scmp.lt.s32.totalorder %s32_s22, %s32_s22 }
   0xb   :  { %p847_p3 = scmp.ne.s32.totalorder %s32_s22, %s846_s8  ;;  %p852_p5 = scmp.lt.s32.totalorder %s846_s8, %s846_s8 }
   0xd   :  { %p853_p6 = por %p852_p5, %p851_p4 }
   0xf   :  { %p854_p7 = pnand %p853_p6, %p847_p3 }
  0x11   :  { %857 = shalt.err (!%p854_p7)
}
  0x12   :  { %s932_s9 = smov 64   ;;  %s933_s10 = smov 4  }
  0x13   :  { %37 = dma.hbm_to_vmem [thread:$0]  %s1056_s1, 1024, %s32_s22, [#allocation6], %s932_s9, %s932_s9, %s933_s10  }
  0x14   :  { %s858_s15 = scalar_lea.hbm %s1055_s0, 1024 }
  0x15   :  { %p859_p8 = scmp.ne.s32.totalorder %s1055_s0, %s858_s15  ;;  %p862_p9 = scmp.lt.u32.totalorder %s858_s15, %s1055_s0 }
  0x17   :  { %p864_p10 = pnand %p862_p9, %p859_p8 }
  0x19   :  { %867 = shalt.err (!%p864_p10)
}
  0x1a   :  { %s868_s20 = scalar_lea.vmem %s974_s24, 1024  ;;  %p873_p12 = scmp.lt.s32.totalorder %s974_s24, %s974_s24 }
  0x1b   :  { %p869_p11 = scmp.ne.s32.totalorder %s974_s24, %s868_s20  ;;  %p874_p13 = scmp.lt.s32.totalorder %s868_s20, %s868_s20 }
  0x1d   :  { %p875_p0 = por %p874_p13, %p873_p12 }
  0x1f   :  { %p876_p1 = pnand %p875_p0, %p869_p11 }
  0x21   :  { %879 = shalt.err (!%p876_p1)
}
  0x22   :  { %25 = dma.hbm_to_vmem [thread:$0]  %s1055_s0, 1024, %s974_s24, [#allocation3], %s932_s9, %s932_s9, %s933_s10  }
  0x23   :  { %s934_s22 = smov [#allocation7]   ;;  %s880_s27 = scalar_lea.hbm %s1058_s3, 1024 }
  0x24   :  { %s45_s23 = sshll.u32 %s934_s22, 4  ;;  %p881_p2 = scmp.ne.s32.totalorder %s1058_s3, %s880_s27  ;;  %s46_s23 = int_to_ptr.vmem [resolvable:$true] %s45_s23 }
  0x25   :  { %p884_p3 = scmp.lt.u32.totalorder %s880_s27, %s1058_s3 }
  0x27   :  { %p886_p4 = pnand %p884_p3, %p881_p2 }
  0x29   :  { %889 = shalt.err (!%p886_p4)
}
  0x2a   :  { %s890_s8 = scalar_lea.vmem %s46_s23, 1024  ;;  %p895_p6 = scmp.lt.s32.totalorder %s46_s23, %s46_s23 }
  0x2b   :  { %p891_p5 = scmp.ne.s32.totalorder %s46_s23, %s890_s8  ;;  %p896_p7 = scmp.lt.s32.totalorder %s890_s8, %s890_s8 }
  0x2d   :  { %p897_p8 = por %p896_p7, %p895_p6 }
  0x2f   :  { %p898_p9 = pnand %p897_p8, %p891_p5 }
  0x31   :  { %901 = shalt.err (!%p898_p9)
}
  0x32   :  { %51 = dma.hbm_to_vmem [thread:$0]  %s1058_s3, 1024, %s46_s23, [#allocation6], %s932_s9, %s932_s9, %s933_s10  }
  0x33   :  { %924 = dma.done.wait [#allocation3], 1024  }
  0x34   :  { %925 = vsyncadd [#allocation3], 4294966272 }
  0x35   :  { %926 = dma.done.wait [#allocation6], 2048  }
  0x36   :  { %927 = vsyncadd [#allocation6], 4294965248  ;;  %v808_v0 = vld [vmem:[#allocation5] sm:$0xff]   ;;  %v809_v1 = vld [vmem:[#allocation5 + $0x8] sm:$0xff]   ;;  %vm936_vm0 = vmmov 0   ;;  %s938_s12 = smov [#allocation8]  }
  0x37   :  { %676 = vmatprep.subr.bf16.mxu1 %v808_v0  ;;  %v810_v2 = vld [vmem:[#allocation5 + $0x10] sm:$0xff]   ;;  %v811_v3 = vld [vmem:[#allocation5 + $0x18] sm:$0xff]   ;;  %v816_v4 = vld [vmem:[#allocation2] sm:$0xff]   ;;  %s590_s13 = sshll.u32 %s938_s12, 4  ;;  %s591_s13 = int_to_ptr.vmem [resolvable:$true] %s590_s13 }
  0x38   :  { %677 = vmatpush3.bf16.msra.mxu1 %v808_v0  ;;  %692 = vmatprep.mubr.bf16.mxu1 %v816_v4  ;;  %v812_v5 = vld [vmem:[#allocation5 + $0x20] sm:$0xff]   ;;  %v813_v6 = vld [vmem:[#allocation5 + $0x28] sm:$0xff]   ;;  %v814_v7 = vld [vmem:[#allocation5 + $0x30] sm:$0xff]   ;;  %s902_s14 = scalar_lea.vmem %s591_s13, 16  ;;  %s906_s15 = scalar_lea.vmem %s591_s13, 32 }
  0x39   :  { %678 = vmatprep.subr.bf16.mxu1 %v809_v1  ;;  %v815_v8 = vld [vmem:[#allocation5 + $0x38] sm:$0xff]   ;;  %v824_v9 = vld [vmem:[#allocation7] sm:$0xff]   ;;  %v817_v10 = vld [vmem:[#allocation2 + $0x8] sm:$0xff]   ;;  %p903_p10 = scmp.ne.s32.totalorder %s591_s13, %s902_s14  ;;  %p907_p11 = scmp.lt.s32.totalorder %s591_s13, %s591_s13 }
  0x3a   :  { %v818_v11 = vld [vmem:[#allocation2 + $0x10] sm:$0xff]   ;;  %v825_v12 = vld [vmem:[#allocation7 + $0x8] sm:$0xff]   ;;  %v819_v14 = vld [vmem:[#allocation2 + $0x18] sm:$0xff]   ;;  %p908_p12 = scmp.lt.s32.totalorder %s906_s15, %s902_s14 }
  0x3b   :  { %v826_v13 = vld [vmem:[#allocation7 + $0x10] sm:$0xff]   ;;  %v820_v15 = vld [vmem:[#allocation2 + $0x20] sm:$0xff]   ;;  %v827_v16 = vld [vmem:[#allocation7 + $0x18] sm:$0xff]  }
  0x3c   :  { %679 = vmatpush3.bf16.msra.mxu1 %v809_v1  ;;  %v828_v17 = vld [vmem:[#allocation7 + $0x20] sm:$0xff]   ;;  %v821_v18 = vld [vmem:[#allocation2 + $0x28] sm:$0xff]   ;;  %v822_v19 = vld [vmem:[#allocation2 + $0x30] sm:$0xff]   ;;  %p909_p13 = por %p908_p12, %p907_p11 }
  0x3d   :  { %680 = vmatprep.subr.bf16.mxu1 %v810_v2  ;;  %v829_v20 = vld [vmem:[#allocation7 + $0x28] sm:$0xff]   ;;  %v823_v21 = vld [vmem:[#allocation2 + $0x38] sm:$0xff]   ;;  %v830_v22 = vld [vmem:[#allocation7 + $0x30] sm:$0xff]  }
  0x3e   :  { %v831_v23 = vld [vmem:[#allocation7 + $0x38] sm:$0xff]   ;;  %v600_v24 = vld [vmem:[%s1057_s2] ss:$0 sm:$0xff]  ;;  %p910_p0 = pnand %p909_p13, %p903_p10 }
  0x40   :  { %681 = vmatpush3.bf16.msra.mxu1 %v810_v2 }
  0x41   :  { %682 = vmatprep.subr.bf16.mxu1 %v811_v3 }
  0x44   :  { %683 = vmatpush3.bf16.msra.mxu1 %v811_v3 }
  0x45   :  { %684 = vmatprep.subr.bf16.mxu1 %v812_v5 }
  0x48   :  { %685 = vmatpush3.bf16.msra.mxu1 %v812_v5 }
  0x49   :  { %686 = vmatprep.subr.bf16.mxu1 %v813_v6 }
  0x4c   :  { %687 = vmatpush3.bf16.msra.mxu1 %v813_v6 }
  0x4d   :  { %688 = vmatprep.subr.bf16.mxu1 %v814_v7 }
  0x50   :  { %689 = vmatpush3.bf16.msra.mxu1 %v814_v7 }
  0x51   :  { %690 = vmatprep.subr.bf16.mxu1 %v815_v8 }
  0x54   :  { %691 = vmatpush3.bf16.msra.mxu1 %v815_v8 }
  0x55   :  { %708 = vmatprep.subr.bf16.mxu1 %v824_v9 }
  0x57   :  { %693 = vmatmul.mubr.bf16.vlgmr.msra.gmra.mrb[0].mxu1 %v817_v10 }
  0x58   :  { %696 = vmatprep.mubr.bf16.mxu1 %v818_v11  ;;  %709 = vmatpush3.bf16.msra.mxu1 %v824_v9 }
  0x59   :  { %710 = vmatprep.subr.bf16.mxu1 %v825_v12 }
  0x5c   :  { %711 = vmatpush3.bf16.msra.mxu1 %v825_v12 }
  0x5d   :  { %712 = vmatprep.subr.bf16.mxu1 %v826_v13 }
  0x5f   :  { %697 = vmatmul.mubr.bf16.gmra.mrb[4].mxu1 %v819_v14 }
  0x60   :  { %700 = vmatprep.mubr.bf16.mxu1 %v820_v15  ;;  %713 = vmatpush3.bf16.msra.mxu1 %v826_v13 }
  0x61   :  { %714 = vmatprep.subr.bf16.mxu1 %v827_v16 }
  0x64   :  { %715 = vmatpush3.bf16.msra.mxu1 %v827_v16 }
  0x65   :  { %716 = vmatprep.subr.bf16.mxu1 %v828_v17 }
  0x67   :  { %701 = vmatmul.mubr.bf16.gmra.mrb[8].mxu1 %v821_v18  ;;  %v937_v18 = vmov 0.0  }
  0x68   :  { %704 = vmatprep.mubr.bf16.mxu1 %v822_v19  ;;  %717 = vmatpush3.bf16.msra.mxu1 %v828_v17  ;;  %v935_v17 = vmov 0.0|0.0   ;;  %v617_v19 = vld [vmem:[%s1059_s4] ss:$0 sm:$0xff] }
  0x69   :  { %718 = vmatprep.subr.bf16.mxu1 %v829_v20  ;;  %775 = vmatprep.subr.bf16.mxu0 %v935_v17 }
  0x6a   :  { %772 = vmatprep.mubr.msk.f32.mxu0 %vm936_vm0, %v937_v18 }
  0x6c   :  { %719 = vmatpush3.bf16.msra.mxu1 %v829_v20 }
  0x6d   :  { %720 = vmatprep.subr.bf16.mxu1 %v830_v22 }
  0x6f   :  { %705 = vmatmul.mubr.bf16.gmra.mrb[12].mxu1 %v823_v21 }
  0x70   :  { %721 = vmatpush3.bf16.msra.mxu1 %v830_v22 }
  0x71   :  { %722 = vmatprep.subr.bf16.mxu1 %v831_v23 }
  0x74   :  { %723 = vmatpush3.bf16.msra.mxu1 %v831_v23 }
 0x12a   :  { %v694_v25 = vpop.f32.mrb[0].mxu1 }
 0x12b   :  { %v244_v26 = vadd.f32 %v694_v25, %v600_v24  ;;  %v235_v27 = vpop.f32.mrb[1].mxu1 }
 0x12c   :  { %v236_v28 = vadd.f32 %v600_v24, %v235_v27  ;;  %v695_v29 = vpop.f32.mrb[2].mxu1 }
 0x12d   :  { %v247_v30 = vadd.f32 %v695_v29, %v600_v24  ;;  %v238_v31 = vpop.f32.mrb[3].mxu1  ;;  %v300_v33 = vmax.f32 %v244_v26, 0.0 }
 0x12e   :  { %v239_v32 = vadd.f32 %v600_v24, %v238_v31  ;;  %v298_v35 = vmax.f32 %v236_v28, 0.0 }
 0x12f   :  { %v301_v34 = vmax.f32 %v247_v30, 0.0 }
 0x130   :  { %v299_v36 = vmax.f32 %v239_v32, 0.0 }
 0x131   :  { %v315_v37 = vpack.c.bf16 %v301_v34, %v300_v33 }
 0x132   :  { %v314_v38 = vpack.c.bf16 %v299_v36, %v298_v35  ;;  %v698_v39 = vpop.f32.mrb[4].mxu1 }
 0x133   :  { %v260_v40 = vadd.f32 %v698_v39, %v600_v24  ;;  %v251_v41 = vpop.f32.mrb[5].mxu1 }
 0x134   :  { %v252_v42 = vadd.f32 %v600_v24, %v251_v41  ;;  %724 = vmatprep.mubr.bf16.mxu1 %v314_v38  ;;  %v699_v43 = vpop.f32.mrb[6].mxu1 }
 0x135   :  { %v304_v44 = vmax.f32 %v260_v40, 0.0  ;;  %v263_v45 = vadd.f32 %v699_v43, %v600_v24  ;;  %725 = vmatmul.mubr.bf16.vlgmr.msra.gmra.mrb[16].mxu1 %v315_v37  ;;  %v254_v46 = vpop.f32.mrb[7].mxu1 }
 0x136   :  { %v302_v47 = vmax.f32 %v252_v42, 0.0  ;;  %v255_v48 = vadd.f32 %v600_v24, %v254_v46 }
 0x137   :  { %v305_v49 = vmax.f32 %v263_v45, 0.0 }
 0x138   :  { %v303_v50 = vmax.f32 %v255_v48, 0.0 }
 0x139   :  { %v317_v51 = vpack.c.bf16 %v305_v49, %v304_v44 }
 0x13a   :  { %v316_v52 = vpack.c.bf16 %v303_v50, %v302_v47  ;;  %v702_v53 = vpop.f32.mrb[8].mxu1 }
 0x13b   :  { %v276_v54 = vadd.f32 %v702_v53, %v600_v24  ;;  %v267_v55 = vpop.f32.mrb[9].mxu1 }
 0x13c   :  { %728 = vmatprep.mubr.bf16.mxu1 %v316_v52  ;;  %v268_v56 = vadd.f32 %v600_v24, %v267_v55  ;;  %v703_v57 = vpop.f32.mrb[10].mxu1 }
 0x13d   :  { %729 = vmatmul.mubr.bf16.gmra.mrb[20].mxu1 %v317_v51  ;;  %v308_v58 = vmax.f32 %v276_v54, 0.0  ;;  %v279_v59 = vadd.f32 %v703_v57, %v600_v24  ;;  %v270_v60 = vpop.f32.mrb[11].mxu1 }
 0x13e   :  { %v306_v61 = vmax.f32 %v268_v56, 0.0  ;;  %v271_v62 = vadd.f32 %v600_v24, %v270_v60 }
 0x13f   :  { %v309_v63 = vmax.f32 %v279_v59, 0.0 }
 0x140   :  { %v307_v0 = vmax.f32 %v271_v62, 0.0 }
 0x141   :  { %v319_v1 = vpack.c.bf16 %v309_v63, %v308_v58 }
 0x142   :  { %v318_v2 = vpack.c.bf16 %v307_v0, %v306_v61  ;;  %v706_v3 = vpop.f32.mrb[12].mxu1 }
 0x143   :  { %v292_v4 = vadd.f32 %v706_v3, %v600_v24  ;;  %v283_v5 = vpop.f32.mrb[13].mxu1 }
 0x144   :  { %732 = vmatprep.mubr.bf16.mxu1 %v318_v2  ;;  %v284_v6 = vadd.f32 %v600_v24, %v283_v5  ;;  %v707_v7 = vpop.f32.mrb[14].mxu1 }
 0x145   :  { %733 = vmatmul.mubr.bf16.gmra.mrb[24].mxu1 %v319_v1  ;;  %v312_v8 = vmax.f32 %v292_v4, 0.0  ;;  %v295_v9 = vadd.f32 %v707_v7, %v600_v24  ;;  %v286_v10 = vpop.f32.mrb[15].mxu1 }
 0x146   :  { %v310_v11 = vmax.f32 %v284_v6, 0.0  ;;  %v287_v12 = vadd.f32 %v600_v24, %v286_v10 }
 0x147   :  { %v313_v13 = vmax.f32 %v295_v9, 0.0 }
 0x148   :  { %v311_v14 = vmax.f32 %v287_v12, 0.0  ;;  %v506_v12 = vld [vmem:[%s1060_s5] sm:$0xff] }
 0x149   :  { %v321_v15 = vpack.c.bf16 %v313_v13, %v312_v8 }
 0x14a   :  { %v320_v16 = vpack.c.bf16 %v311_v14, %v310_v11 }
 0x14c   :  { %736 = vmatprep.mubr.bf16.mxu1 %v320_v16 }
 0x14d   :  { %737 = vmatmul.mubr.bf16.gmra.mrb[28].mxu1 %v321_v15 }
 0x208   :  { %v726_v20 = vpop.f32.mrb[16].mxu1 }
 0x209   :  { %v436_v21 = vadd.f32 %v726_v20, %v617_v19  ;;  %v427_v22 = vpop.f32.mrb[17].mxu1 }
 0x20a   :  { %v428_v23 = vadd.f32 %v617_v19, %v427_v22  ;;  %v727_v24 = vpop.f32.mrb[18].mxu1 }
 0x20b   :  { %v439_v25 = vadd.f32 %v727_v24, %v617_v19  ;;  %v430_v26 = vpop.f32.mrb[19].mxu1  ;;  %v492_v28 = vmax.f32 %v436_v21, 0.0 }
 0x20c   :  { %v431_v27 = vadd.f32 %v617_v19, %v430_v26  ;;  %v490_v30 = vmax.f32 %v428_v23, 0.0 }
 0x20d   :  { %v493_v29 = vmax.f32 %v439_v25, 0.0 }
 0x20e   :  { %v491_v31 = vmax.f32 %v431_v27, 0.0 }
 0x20f   :  { %v779_v32 = vpack.c.bf16 %v493_v29, %v492_v28 }
 0x210   :  { %v730_v33 = vpop.f32.mrb[20].mxu1  ;;  %v776_v34 = vpack.c.bf16 %v491_v31, %v490_v30 }
 0x211   :  { %v452_v35 = vadd.f32 %v730_v33, %v617_v19  ;;  %v443_v36 = vpop.f32.mrb[21].mxu1 }
 0x212   :  { %v444_v37 = vadd.f32 %v617_v19, %v443_v36  ;;  %777 = vmatpush3.bf16.xpose.msra.mxu0 %v776_v34  ;;  %v731_v38 = vpop.f32.mrb[22].mxu1 }
 0x213   :  { %v496_v39 = vmax.f32 %v452_v35, 0.0  ;;  %v455_v40 = vadd.f32 %v731_v38, %v617_v19  ;;  %v446_v41 = vpop.f32.mrb[23].mxu1  ;;  %778 = vmatprep.subr.bf16.mxu0 %v935_v17 }
 0x214   :  { %v494_v42 = vmax.f32 %v444_v37, 0.0  ;;  %v447_v43 = vadd.f32 %v617_v19, %v446_v41 }
 0x215   :  { %v497_v44 = vmax.f32 %v455_v40, 0.0 }
 0x216   :  { %v495_v45 = vmax.f32 %v447_v43, 0.0 }
 0x217   :  { %v785_v46 = vpack.c.bf16 %v497_v44, %v496_v39 }
 0x218   :  { %v782_v47 = vpack.c.bf16 %v495_v45, %v494_v42  ;;  %v734_v48 = vpop.f32.mrb[24].mxu1 }
 0x219   :  { %v468_v49 = vadd.f32 %v734_v48, %v617_v19  ;;  %v459_v50 = vpop.f32.mrb[25].mxu1 }
 0x21a   :  { %780 = vmatpush3.bf16.xpose.msra.mxu0 %v779_v32  ;;  %v460_v51 = vadd.f32 %v617_v19, %v459_v50  ;;  %v735_v52 = vpop.f32.mrb[26].mxu1 }
 0x21b   :  { %v500_v53 = vmax.f32 %v468_v49, 0.0  ;;  %781 = vmatprep.subr.bf16.mxu0 %v935_v17  ;;  %v471_v54 = vadd.f32 %v735_v52, %v617_v19  ;;  %v462_v55 = vpop.f32.mrb[27].mxu1 }
 0x21c   :  { %v498_v56 = vmax.f32 %v460_v51, 0.0  ;;  %v463_v57 = vadd.f32 %v617_v19, %v462_v55 }
 0x21d   :  { %v501_v58 = vmax.f32 %v471_v54, 0.0 }
 0x21e   :  { %v499_v59 = vmax.f32 %v463_v57, 0.0 }
 0x21f   :  { %v791_v60 = vpack.c.bf16 %v501_v58, %v500_v53 }
 0x220   :  { %v788_v61 = vpack.c.bf16 %v499_v59, %v498_v56  ;;  %v738_v62 = vpop.f32.mrb[28].mxu1 }
 0x221   :  { %v484_v63 = vadd.f32 %v738_v62, %v617_v19  ;;  %v475_v0 = vpop.f32.mrb[29].mxu1 }
 0x222   :  { %783 = vmatpush3.bf16.xpose.msra.mxu0 %v782_v47  ;;  %v476_v1 = vadd.f32 %v617_v19, %v475_v0  ;;  %v739_v2 = vpop.f32.mrb[30].mxu1 }
 0x223   :  { %784 = vmatprep.subr.bf16.mxu0 %v935_v17  ;;  %v504_v3 = vmax.f32 %v484_v63, 0.0  ;;  %v487_v4 = vadd.f32 %v739_v2, %v617_v19  ;;  %v478_v5 = vpop.f32.mrb[31].mxu1 }
 0x224   :  { %v502_v6 = vmax.f32 %v476_v1, 0.0  ;;  %v479_v7 = vadd.f32 %v617_v19, %v478_v5 }
 0x225   :  { %v505_v8 = vmax.f32 %v487_v4, 0.0 }
 0x226   :  { %v503_v9 = vmax.f32 %v479_v7, 0.0 }
 0x227   :  { %v797_v10 = vpack.c.bf16 %v505_v8, %v504_v3 }
 0x228   :  { %v794_v11 = vpack.c.bf16 %v503_v9, %v502_v6 }
 0x22a   :  { %786 = vmatpush3.bf16.xpose.msra.mxu0 %v785_v46 }
 0x22b   :  { %787 = vmatprep.subr.bf16.mxu0 %v935_v17 }
 0x232   :  { %789 = vmatpush3.bf16.xpose.msra.mxu0 %v788_v61 }
 0x233   :  { %790 = vmatprep.subr.bf16.mxu0 %v935_v17 }
 0x23a   :  { %792 = vmatpush3.bf16.xpose.msra.mxu0 %v791_v60 }
 0x23b   :  { %793 = vmatprep.subr.bf16.mxu0 %v935_v17 }
 0x242   :  { %795 = vmatpush3.bf16.xpose.msra.mxu0 %v794_v11 }
 0x243   :  { %796 = vmatprep.subr.bf16.mxu0 %v935_v17 }
 0x24a   :  { %798 = vmatpush3.bf16.xpose.msra.mxu0 %v797_v10 }
 0x251   :  { %773 = vmatmul.mubr.f32.vlgmr.msra.gmra.mrb[0].mxu0 %v506_v12 }
 0x324   :  { %v573_v13 = vpop.f32.mrb[0].mxu0 }
 0x325   :  { %v626_v14 = vmul.f32 -1.442695, %v573_v13  ;;  %v774_v15 = vpop.f32.mrb[1].mxu0 }
 0x327   :  { %832 = vpow2.f32 %v626_v14 }
 0x331   :  { %v833_v16 = vpop.eup %832 }
 0x332   :  { %v580_v18 = vadd.f32 1.0, %v833_v16 }
 0x334   :  { %834 = vrcp.f32 %v580_v18 }
 0x33e   :  { %v835_v19 = vpop.eup %834 }
 0x33f   :  { %583 = vst [vmem:[#allocation8] sm:$0x1] %v835_v19 }
 0x340   :  { %913 = shalt.err (!%p910_p0)
}
 0x341   :  { %s914_s17 = scalar_lea.hbm %s1061_s6, 16 }
 0x342   :  { %p915_p1 = scmp.ne.s32.totalorder %s1061_s6, %s914_s17  ;;  %p918_p2 = scmp.lt.u32.totalorder %s914_s17, %s1061_s6 }
 0x344   :  { %p920_p3 = pnand %p918_p2, %p915_p1 }
 0x346   :  { %923 = shalt.err (!%p920_p3)
}
 0x347   :  { %593 = dma.vmem_to_hbm [thread:$0]  %s591_s13, 16, %s1061_s6, [#allocation4]  }
 0x348   :  { %928 = dma.done.wait [#allocation4], 16  }
 0x349   :  { %929 = vsyncadd [#allocation4], 4294967280 }
 0x34a   :  { %597 = vsyncpa [#allocation3], 1 }
 0x34b   :  { %598 = vsyncpa [#allocation6], 1 }
 0x34c   :  { %599 = vsyncpa [#allocation4], 1 }

// kernel: tpu_custom_call.1
= control target key start
LH: loop header
LB: loop body
LE: loop exit
PB: predicated region body
PF: predicated region fallthrough
CT: control target
= control target key end

     0   :  { %11 = vsyncpa [#allocation3], 0  ;;  %s1055_s0 = inlined_call_operand.hbm [shape: bf16[128,128], index: 0, kind: input, shape index: {}]   ;;  %s1056_s1 = inlined_call_operand.hbm [shape: bf16[128,128], index: 1, kind: input, shape index: {}]   ;;  %s1057_s2 = inlined_call_operand.vmem [shape: f32[1,128], index: 2, kind: input, shape index: {}]   ;;  %s1058_s3 = inlined_call_operand.hbm [shape: bf16[128,128], index: 3, kind: input, shape index: {}]   ;;  %s1059_s4 = inlined_call_operand.vmem [shape: f32[1,128], index: 4, kind: input, shape index: {}]   ;;  %s1060_s5 = inlined_call_operand.vmem [shape: f32[8,128], index: 5, kind: input, shape index: {}]   ;;  %s1061_s6 = inlined_call_operand.hbm [shape: f32[1,128], index: 6, kind: output, shape index: {}]  }
   0x1   :  { %12 = vsyncpa [#allocation6], 0 }
   0x2   :  { %13 = vsyncpa [#allocation4], 0  ;;  %s930_s21 = smov [#allocation5]   ;;  %s931_s23 = smov [#allocation2]  }
   0x3   :  { %s31_s22 = sshll.u32 %s930_s21, 4  ;;  %s19_s24 = sshll.u32 %s931_s23, 4  ;;  %s32_s22 = int_to_ptr.vmem [resolvable:$true] %s31_s22  ;;  %s974_s24 = int_to_ptr.vmem [resolvable:$true] %s19_s24 }
   0x4   :  { %s836_s27 = scalar_lea.hbm %s1056_s1, 1024 }
   0x5   :  { %p837_p0 = scmp.ne.s32.totalorder %s1056_s1, %s836_s27  ;;  %p840_p1 = scmp.lt.u32.totalorder %s836_s27, %s1056_s1 }
   0x7   :  { %p842_p2 = pnand %p840_p1, %p837_p0 }
   0x9   :  { %845 = shalt.err (!%p842_p2)
}
   0xa   :  { %s846_s8 = scalar_lea.vmem %s32_s22, 1024  ;;  %p851_p4 = scmp.lt.s32.totalorder %s32_s22, %s32_s22 }
   0xb   :  { %p847_p3 = scmp.ne.s32.totalorder %s32_s22, %s846_s8  ;;  %p852_p5 = scmp.lt.s32.totalorder %s846_s8, %s846_s8 }
   0xd   :  { %p853_p6 = por %p852_p5, %p851_p4 }
   0xf   :  { %p854_p7 = pnand %p853_p6, %p847_p3 }
  0x11   :  { %857 = shalt.err (!%p854_p7)
}
  0x12   :  { %s932_s9 = smov 64   ;;  %s933_s10 = smov 4  }
  0x13   :  { %37 = dma.hbm_to_vmem [thread:$0]  %s1056_s1, 1024, %s32_s22, [#allocation6], %s932_s9, %s932_s9, %s933_s10  }
  0x14   :  { %s858_s15 = scalar_lea.hbm %s1055_s0, 1024 }
  0x15   :  { %p859_p8 = scmp.ne.s32.totalorder %s1055_s0, %s858_s15  ;;  %p862_p9 = scmp.lt.u32.totalorder %s858_s15, %s1055_s0 }
  0x17   :  { %p864_p10 = pnand %p862_p9, %p859_p8 }
  0x19   :  { %867 = shalt.err (!%p864_p10)
}
  0x1a   :  { %s868_s20 = scalar_lea.vmem %s974_s24, 1024  ;;  %p873_p12 = scmp.lt.s32.totalorder %s974_s24, %s974_s24 }
  0x1b   :  { %p869_p11 = scmp.ne.s32.totalorder %s974_s24, %s868_s20  ;;  %p874_p13 = scmp.lt.s32.totalorder %s868_s20, %s868_s20 }
  0x1d   :  { %p875_p0 = por %p874_p13, %p873_p12 }
  0x1f   :  { %p876_p1 = pnand %p875_p0, %p869_p11 }
  0x21   :  { %879 = shalt.err (!%p876_p1)
}
  0x22   :  { %25 = dma.hbm_to_vmem [thread:$0]  %s1055_s0, 1024, %s974_s24, [#allocation3], %s932_s9, %s932_s9, %s933_s10  }
  0x23   :  { %s934_s22 = smov [#allocation7]   ;;  %s880_s27 = scalar_lea.hbm %s1058_s3, 1024 }
  0x24   :  { %s45_s23 = sshll.u32 %s934_s22, 4  ;;  %p881_p2 = scmp.ne.s32.totalorder %s1058_s3, %s880_s27  ;;  %s46_s23 = int_to_ptr.vmem [resolvable:$true] %s45_s23 }
  0x25   :  { %p884_p3 = scmp.lt.u32.totalorder %s880_s27, %s1058_s3 }
  0x27   :  { %p886_p4 = pnand %p884_p3, %p881_p2 }
  0x29   :  { %889 = shalt.err (!%p886_p4)
}
  0x2a   :  { %s890_s8 = scalar_lea.vmem %s46_s23, 1024  ;;  %p895_p6 = scmp.lt.s32.totalorder %s46_s23, %s46_s23 }
  0x2b   :  { %p891_p5 = scmp.ne.s32.totalorder %s46_s23, %s890_s8  ;;  %p896_p7 = scmp.lt.s32.totalorder %s890_s8, %s890_s8 }
  0x2d   :  { %p897_p8 = por %p896_p7, %p895_p6 }
  0x2f   :  { %p898_p9 = pnand %p897_p8, %p891_p5 }
  0x31   :  { %901 = shalt.err (!%p898_p9)
}
  0x32   :  { %51 = dma.hbm_to_vmem [thread:$0]  %s1058_s3, 1024, %s46_s23, [#allocation6], %s932_s9, %s932_s9, %s933_s10  }
  0x33   :  { %924 = dma.done.wait [#allocation3], 1024  }
  0x34   :  { %925 = vsyncadd [#allocation3], 4294966272 }
  0x35   :  { %926 = dma.done.wait [#allocation6], 2048  }
  0x36   :  { %927 = vsyncadd [#allocation6], 4294965248  ;;  %v808_v0 = vld [vmem:[#allocation5] sm:$0xff]   ;;  %v809_v1 = vld [vmem:[#allocation5 + $0x8] sm:$0xff]   ;;  %vm936_vm0 = vmmov 0   ;;  %s938_s12 = smov [#allocation8]  }
  0x37   :  { %676 = vmatprep.subr.bf16.mxu1 %v808_v0  ;;  %v810_v2 = vld [vmem:[#allocation5 + $0x10] sm:$0xff]   ;;  %v811_v3 = vld [vmem:[#allocation5 + $0x18] sm:$0xff]   ;;  %v816_v4 = vld [vmem:[#allocation2] sm:$0xff]   ;;  %s590_s13 = sshll.u32 %s938_s12, 4  ;;  %s591_s13 = int_to_ptr.vmem [resolvable:$true] %s590_s13 }
  0x38   :  { %677 = vmatpush3.bf16.msra.mxu1 %v808_v0  ;;  %692 = vmatprep.mubr.bf16.mxu1 %v816_v4  ;;  %v812_v5 = vld [vmem:[#allocation5 + $0x20] sm:$0xff]   ;;  %v813_v6 = vld [vmem:[#allocation5 + $0x28] sm:$0xff]   ;;  %v814_v7 = vld [vmem:[#allocation5 + $0x30] sm:$0xff]   ;;  %s902_s14 = scalar_lea.vmem %s591_s13, 16  ;;  %s906_s15 = scalar_lea.vmem %s591_s13, 32 }
  0x39   :  { %678 = vmatprep.subr.bf16.mxu1 %v809_v1  ;;  %v815_v8 = vld [vmem:[#allocation5 + $0x38] sm:$0xff]   ;;  %v824_v9 = vld [vmem:[#allocation7] sm:$0xff]   ;;  %v817_v10 = vld [vmem:[#allocation2 + $0x8] sm:$0xff]   ;;  %p903_p10 = scmp.ne.s32.totalorder %s591_s13, %s902_s14  ;;  %p907_p11 = scmp.lt.s32.totalorder %s591_s13, %s591_s13 }
  0x3a   :  { %v818_v11 = vld [vmem:[#allocation2 + $0x10] sm:$0xff]   ;;  %v825_v12 = vld [vmem:[#allocation7 + $0x8] sm:$0xff]   ;;  %v819_v14 = vld [vmem:[#allocation2 + $0x18] sm:$0xff]   ;;  %p908_p12 = scmp.lt.s32.totalorder %s906_s15, %s902_s14 }
  0x3b   :  { %v826_v13 = vld [vmem:[#allocation7 + $0x10] sm:$0xff]   ;;  %v820_v15 = vld [vmem:[#allocation2 + $0x20] sm:$0xff]   ;;  %v827_v16 = vld [vmem:[#allocation7 + $0x18] sm:$0xff]  }
  0x3c   :  { %679 = vmatpush3.bf16.msra.mxu1 %v809_v1  ;;  %v828_v17 = vld [vmem:[#allocation7 + $0x20] sm:$0xff]   ;;  %v821_v18 = vld [vmem:[#allocation2 + $0x28] sm:$0xff]   ;;  %v822_v19 = vld [vmem:[#allocation2 + $0x30] sm:$0xff]   ;;  %p909_p13 = por %p908_p12, %p907_p11 }
  0x3d   :  { %680 = vmatprep.subr.bf16.mxu1 %v810_v2  ;;  %v829_v20 = vld [vmem:[#allocation7 + $0x28] sm:$0xff]   ;;  %v823_v21 = vld [vmem:[#allocation2 + $0x38] sm:$0xff]   ;;  %v830_v22 = vld [vmem:[#allocation7 + $0x30] sm:$0xff]  }
  0x3e   :  { %v831_v23 = vld [vmem:[#allocation7 + $0x38] sm:$0xff]   ;;  %v600_v24 = vld [vmem:[%s1057_s2] ss:$0 sm:$0xff]  ;;  %p910_p0 = pnand %p909_p13, %p903_p10 }
  0x40   :  { %681 = vmatpush3.bf16.msra.mxu1 %v810_v2 }
  0x41   :  { %682 = vmatprep.subr.bf16.mxu1 %v811_v3 }
  0x44   :  { %683 = vmatpush3.bf16.msra.mxu1 %v811_v3 }
  0x45   :  { %684 = vmatprep.subr.bf16.mxu1 %v812_v5 }
  0x48   :  { %685 = vmatpush3.bf16.msra.mxu1 %v812_v5 }
  0x49   :  { %686 = vmatprep.subr.bf16.mxu1 %v813_v6 }
  0x4c   :  { %687 = vmatpush3.bf16.msra.mxu1 %v813_v6 }
  0x4d   :  { %688 = vmatprep.subr.bf16.mxu1 %v814_v7 }
  0x50   :  { %689 = vmatpush3.bf16.msra.mxu1 %v814_v7 }
  0x51   :  { %690 = vmatprep.subr.bf16.mxu1 %v815_v8 }
  0x54   :  { %691 = vmatpush3.bf16.msra.mxu1 %v815_v8 }
  0x55   :  { %708 = vmatprep.subr.bf16.mxu1 %v824_v9 }
  0x57   :  { %693 = vmatmul.mubr.bf16.vlgmr.msra.gmra.mrb[0].mxu1 %v817_v10 }
  0x58   :  { %696 = vmatprep.mubr.bf16.mxu1 %v818_v11  ;;  %709 = vmatpush3.bf16.msra.mxu1 %v824_v9 }
  0x59   :  { %710 = vmatprep.subr.bf16.mxu1 %v825_v12 }
  0x5c   :  { %711 = vmatpush3.bf16.msra.mxu1 %v825_v12 }
  0x5d   :  { %712 = vmatprep.subr.bf16.mxu1 %v826_v13 }
  0x5f   :  { %697 = vmatmul.mubr.bf16.gmra.mrb[4].mxu1 %v819_v14 }
  0x60   :  { %700 = vmatprep.mubr.bf16.mxu1 %v820_v15  ;;  %713 = vmatpush3.bf16.msra.mxu1 %v826_v13 }
  0x61   :  { %714 = vmatprep.subr.bf16.mxu1 %v827_v16 }
  0x64   :  { %715 = vmatpush3.bf16.msra.mxu1 %v827_v16 }
  0x65   :  { %716 = vmatprep.subr.bf16.mxu1 %v828_v17 }
  0x67   :  { %701 = vmatmul.mubr.bf16.gmra.mrb[8].mxu1 %v821_v18  ;;  %v937_v18 = vmov 0.0  }
  0x68   :  { %704 = vmatprep.mubr.bf16.mxu1 %v822_v19  ;;  %717 = vmatpush3.bf16.msra.mxu1 %v828_v17  ;;  %v935_v17 = vmov 0.0|0.0   ;;  %v617_v19 = vld [vmem:[%s1059_s4] ss:$0 sm:$0xff] }
  0x69   :  { %718 = vmatprep.subr.bf16.mxu1 %v829_v20  ;;  %775 = vmatprep.subr.bf16.mxu0 %v935_v17 }
  0x6a   :  { %772 = vmatprep.mubr.msk.f32.mxu0 %vm936_vm0, %v937_v18 }
  0x6c   :  { %719 = vmatpush3.bf16.msra.mxu1 %v829_v20 }
  0x6d   :  { %720 = vmatprep.subr.bf16.mxu1 %v830_v22 }
  0x6f   :  { %705 = vmatmul.mubr.bf16.gmra.mrb[12].mxu1 %v823_v21 }
  0x70   :  { %721 = vmatpush3.bf16.msra.mxu1 %v830_v22 }
  0x71   :  { %722 = vmatprep.subr.bf16.mxu1 %v831_v23 }
  0x74   :  { %723 = vmatpush3.bf16.msra.mxu1 %v831_v23 }
 0x12a   :  { %v694_v25 = vpop.f32.mrb[0].mxu1 }
 0x12b   :  { %v244_v26 = vadd.f32 %v694_v25, %v600_v24  ;;  %v235_v27 = vpop.f32.mrb[1].mxu1 }
 0x12c   :  { %v236_v28 = vadd.f32 %v600_v24, %v235_v27  ;;  %v695_v29 = vpop.f32.mrb[2].mxu1 }
 0x12d   :  { %v247_v30 = vadd.f32 %v695_v29, %v600_v24  ;;  %v238_v31 = vpop.f32.mrb[3].mxu1  ;;  %v300_v33 = vmax.f32 %v244_v26, 0.0 }
 0x12e   :  { %v239_v32 = vadd.f32 %v600_v24, %v238_v31  ;;  %v298_v35 = vmax.f32 %v236_v28, 0.0 }
 0x12f   :  { %v301_v34 = vmax.f32 %v247_v30, 0.0 }
 0x130   :  { %v299_v36 = vmax.f32 %v239_v32, 0.0 }
 0x131   :  { %v315_v37 = vpack.c.bf16 %v301_v34, %v300_v33 }
 0x132   :  { %v314_v38 = vpack.c.bf16 %v299_v36, %v298_v35  ;;  %v698_v39 = vpop.f32.mrb[4].mxu1 }
 0x133   :  { %v260_v40 = vadd.f32 %v698_v39, %v600_v24  ;;  %v251_v41 = vpop.f32.mrb[5].mxu1 }
 0x134   :  { %v252_v42 = vadd.f32 %v600_v24, %v251_v41  ;;  %724 = vmatprep.mubr.bf16.mxu1 %v314_v38  ;;  %v699_v43 = vpop.f32.mrb[6].mxu1 }
 0x135   :  { %v304_v44 = vmax.f32 %v260_v40, 0.0  ;;  %v263_v45 = vadd.f32 %v699_v43, %v600_v24  ;;  %725 = vmatmul.mubr.bf16.vlgmr.msra.gmra.mrb[16].mxu1 %v315_v37  ;;  %v254_v46 = vpop.f32.mrb[7].mxu1 }
 0x136   :  { %v302_v47 = vmax.f32 %v252_v42, 0.0  ;;  %v255_v48 = vadd.f32 %v600_v24, %v254_v46 }
 0x137   :  { %v305_v49 = vmax.f32 %v263_v45, 0.0 }
 0x138   :  { %v303_v50 = vmax.f32 %v255_v48, 0.0 }
 0x139   :  { %v317_v51 = vpack.c.bf16 %v305_v49, %v304_v44 }
 0x13a   :  { %v316_v52 = vpack.c.bf16 %v303_v50, %v302_v47  ;;  %v702_v53 = vpop.f32.mrb[8].mxu1 }
 0x13b   :  { %v276_v54 = vadd.f32 %v702_v53, %v600_v24  ;;  %v267_v55 = vpop.f32.mrb[9].mxu1 }
 0x13c   :  { %728 = vmatprep.mubr.bf16.mxu1 %v316_v52  ;;  %v268_v56 = vadd.f32 %v600_v24, %v267_v55  ;;  %v703_v57 = vpop.f32.mrb[10].mxu1 }
 0x13d   :  { %729 = vmatmul.mubr.bf16.gmra.mrb[20].mxu1 %v317_v51  ;;  %v308_v58 = vmax.f32 %v276_v54, 0.0  ;;  %v279_v59 = vadd.f32 %v703_v57, %v600_v24  ;;  %v270_v60 = vpop.f32.mrb[11].mxu1 }
 0x13e   :  { %v306_v61 = vmax.f32 %v268_v56, 0.0  ;;  %v271_v62 = vadd.f32 %v600_v24, %v270_v60 }
 0x13f   :  { %v309_v63 = vmax.f32 %v279_v59, 0.0 }
 0x140   :  { %v307_v0 = vmax.f32 %v271_v62, 0.0 }
 0x141   :  { %v319_v1 = vpack.c.bf16 %v309_v63, %v308_v58 }
 0x142   :  { %v318_v2 = vpack.c.bf16 %v307_v0, %v306_v61  ;;  %v706_v3 = vpop.f32.mrb[12].mxu1 }
 0x143   :  { %v292_v4 = vadd.f32 %v706_v3, %v600_v24  ;;  %v283_v5 = vpop.f32.mrb[13].mxu1 }
 0x144   :  { %732 = vmatprep.mubr.bf16.mxu1 %v318_v2  ;;  %v284_v6 = vadd.f32 %v600_v24, %v283_v5  ;;  %v707_v7 = vpop.f32.mrb[14].mxu1 }
 0x145   :  { %733 = vmatmul.mubr.bf16.gmra.mrb[24].mxu1 %v319_v1  ;;  %v312_v8 = vmax.f32 %v292_v4, 0.0  ;;  %v295_v9 = vadd.f32 %v707_v7, %v600_v24  ;;  %v286_v10 = vpop.f32.mrb[15].mxu1 }
 0x146   :  { %v310_v11 = vmax.f32 %v284_v6, 0.0  ;;  %v287_v12 = vadd.f32 %v600_v24, %v286_v10 }
 0x147   :  { %v313_v13 = vmax.f32 %v295_v9, 0.0 }
 0x148   :  { %v311_v14 = vmax.f32 %v287_v12, 0.0  ;;  %v506_v12 = vld [vmem:[%s1060_s5] sm:$0xff] }
 0x149   :  { %v321_v15 = vpack.c.bf16 %v313_v13, %v312_v8 }
 0x14a   :  { %v320_v16 = vpack.c.bf16 %v311_v14, %v310_v11 }
 0x14c   :  { %736 = vmatprep.mubr.bf16.mxu1 %v320_v16 }
 0x14d   :  { %737 = vmatmul.mubr.bf16.gmra.mrb[28].mxu1 %v321_v15 }
 0x208   :  { %v726_v20 = vpop.f32.mrb[16].mxu1 }
 0x209   :  { %v436_v21 = vadd.f32 %v726_v20, %v617_v19  ;;  %v427_v22 = vpop.f32.mrb[17].mxu1 }
 0x20a   :  { %v428_v23 = vadd.f32 %v617_v19, %v427_v22  ;;  %v727_v24 = vpop.f32.mrb[18].mxu1 }
 0x20b   :  { %v439_v25 = vadd.f32 %v727_v24, %v617_v19  ;;  %v430_v26 = vpop.f32.mrb[19].mxu1  ;;  %v492_v28 = vmax.f32 %v436_v21, 0.0 }
 0x20c   :  { %v431_v27 = vadd.f32 %v617_v19, %v430_v26  ;;  %v490_v30 = vmax.f32 %v428_v23, 0.0 }
 0x20d   :  { %v493_v29 = vmax.f32 %v439_v25, 0.0 }
 0x20e   :  { %v491_v31 = vmax.f32 %v431_v27, 0.0 }
 0x20f   :  { %v779_v32 = vpack.c.bf16 %v493_v29, %v492_v28 }
 0x210   :  { %v730_v33 = vpop.f32.mrb[20].mxu1  ;;  %v776_v34 = vpack.c.bf16 %v491_v31, %v490_v30 }
 0x211   :  { %v452_v35 = vadd.f32 %v730_v33, %v617_v19  ;;  %v443_v36 = vpop.f32.mrb[21].mxu1 }
 0x212   :  { %v444_v37 = vadd.f32 %v617_v19, %v443_v36  ;;  %777 = vmatpush3.bf16.xpose.msra.mxu0 %v776_v34  ;;  %v731_v38 = vpop.f32.mrb[22].mxu1 }
 0x213   :  { %v496_v39 = vmax.f32 %v452_v35, 0.0  ;;  %v455_v40 = vadd.f32 %v731_v38, %v617_v19  ;;  %v446_v41 = vpop.f32.mrb[23].mxu1  ;;  %778 = vmatprep.subr.bf16.mxu0 %v935_v17 }
 0x214   :  { %v494_v42 = vmax.f32 %v444_v37, 0.0  ;;  %v447_v43 = vadd.f32 %v617_v19, %v446_v41 }
 0x215   :  { %v497_v44 = vmax.f32 %v455_v40, 0.0 }
 0x216   :  { %v495_v45 = vmax.f32 %v447_v43, 0.0 }
 0x217   :  { %v785_v46 = vpack.c.bf16 %v497_v44, %v496_v39 }
 0x218   :  { %v782_v47 = vpack.c.bf16 %v495_v45, %v494_v42  ;;  %v734_v48 = vpop.f32.mrb[24].mxu1 }
 0x219   :  { %v468_v49 = vadd.f32 %v734_v48, %v617_v19  ;;  %v459_v50 = vpop.f32.mrb[25].mxu1 }
 0x21a   :  { %780 = vmatpush3.bf16.xpose.msra.mxu0 %v779_v32  ;;  %v460_v51 = vadd.f32 %v617_v19, %v459_v50  ;;  %v735_v52 = vpop.f32.mrb[26].mxu1 }
 0x21b   :  { %v500_v53 = vmax.f32 %v468_v49, 0.0  ;;  %781 = vmatprep.subr.bf16.mxu0 %v935_v17  ;;  %v471_v54 = vadd.f32 %v735_v52, %v617_v19  ;;  %v462_v55 = vpop.f32.mrb[27].mxu1 }
 0x21c   :  { %v498_v56 = vmax.f32 %v460_v51, 0.0  ;;  %v463_v57 = vadd.f32 %v617_v19, %v462_v55 }
 0x21d   :  { %v501_v58 = vmax.f32 %v471_v54, 0.0 }
 0x21e   :  { %v499_v59 = vmax.f32 %v463_v57, 0.0 }
 0x21f   :  { %v791_v60 = vpack.c.bf16 %v501_v58, %v500_v53 }
 0x220   :  { %v788_v61 = vpack.c.bf16 %v499_v59, %v498_v56  ;;  %v738_v62 = vpop.f32.mrb[28].mxu1 }
 0x221   :  { %v484_v63 = vadd.f32 %v738_v62, %v617_v19  ;;  %v475_v0 = vpop.f32.mrb[29].mxu1 }
 0x222   :  { %783 = vmatpush3.bf16.xpose.msra.mxu0 %v782_v47  ;;  %v476_v1 = vadd.f32 %v617_v19, %v475_v0  ;;  %v739_v2 = vpop.f32.mrb[30].mxu1 }
 0x223   :  { %784 = vmatprep.subr.bf16.mxu0 %v935_v17  ;;  %v504_v3 = vmax.f32 %v484_v63, 0.0  ;;  %v487_v4 = vadd.f32 %v739_v2, %v617_v19  ;;  %v478_v5 = vpop.f32.mrb[31].mxu1 }
 0x224   :  { %v502_v6 = vmax.f32 %v476_v1, 0.0  ;;  %v479_v7 = vadd.f32 %v617_v19, %v478_v5 }
 0x225   :  { %v505_v8 = vmax.f32 %v487_v4, 0.0 }
 0x226   :  { %v503_v9 = vmax.f32 %v479_v7, 0.0 }
 0x227   :  { %v797_v10 = vpack.c.bf16 %v505_v8, %v504_v3 }
 0x228   :  { %v794_v11 = vpack.c.bf16 %v503_v9, %v502_v6 }
 0x22a   :  { %786 = vmatpush3.bf16.xpose.msra.mxu0 %v785_v46 }
 0x22b   :  { %787 = vmatprep.subr.bf16.mxu0 %v935_v17 }
 0x232   :  { %789 = vmatpush3.bf16.xpose.msra.mxu0 %v788_v61 }
 0x233   :  { %790 = vmatprep.subr.bf16.mxu0 %v935_v17 }
 0x23a   :  { %792 = vmatpush3.bf16.xpose.msra.mxu0 %v791_v60 }
 0x23b   :  { %793 = vmatprep.subr.bf16.mxu0 %v935_v17 }
 0x242   :  { %795 = vmatpush3.bf16.xpose.msra.mxu0 %v794_v11 }
 0x243   :  { %796 = vmatprep.subr.bf16.mxu0 %v935_v17 }
 0x24a   :  { %798 = vmatpush3.bf16.xpose.msra.mxu0 %v797_v10 }
 0x251   :  { %773 = vmatmul.mubr.f32.vlgmr.msra.gmra.mrb[0].mxu0 %v506_v12 }
 0x324   :  { %v573_v13 = vpop.f32.mrb[0].mxu0 }
 0x325   :  { %v626_v14 = vmul.f32 -1.442695, %v573_v13  ;;  %v774_v15 = vpop.f32.mrb[1].mxu0 }
 0x327   :  { %832 = vpow2.f32 %v626_v14 }
 0x331   :  { %v833_v16 = vpop.eup %832 }
 0x332   :  { %v580_v18 = vadd.f32 1.0, %v833_v16 }
 0x334   :  { %834 = vrcp.f32 %v580_v18 }
 0x33e   :  { %v835_v19 = vpop.eup %834 }
 0x33f   :  { %583 = vst [vmem:[#allocation8] sm:$0x1] %v835_v19 }
 0x340   :  { %913 = shalt.err (!%p910_p0)
}
 0x341   :  { %s914_s17 = scalar_lea.hbm %s1061_s6, 16 }
 0x342   :  { %p915_p1 = scmp.ne.s32.totalorder %s1061_s6, %s914_s17  ;;  %p918_p2 = scmp.lt.u32.totalorder %s914_s17, %s1061_s6 }
 0x344   :  { %p920_p3 = pnand %p918_p2, %p915_p1 }
 0x346   :  { %923 = shalt.err (!%p920_p3)
}
 0x347   :  { %593 = dma.vmem_to_hbm [thread:$0]  %s591_s13, 16, %s1061_s6, [#allocation4]  }
 0x348   :  { %928 = dma.done.wait [#allocation4], 16  }
 0x349   :  { %929 = vsyncadd [#allocation4], 4294967280 }
 0x34a   :  { %597 = vsyncpa [#allocation3], 1 }
 0x34b   :  { %598 = vsyncpa [#allocation6], 1 }
 0x34c   :  { %599 = vsyncpa [#allocation4], 1 }

</bundles_post_ra>
